<compile_context>
chip_gen: v7x
topology: tpu7x:2x2x1
jax: 0.10.0
libtpu: 0.0.40
codegen_flags: <defaults>
</compile_context>

<pallas_src>
import jax
import jax.numpy as jnp
from jax.experimental import pallas as pl
from jax.experimental.pallas import tpu as pltpu


def _round_up(x, m):
    return (x + m - 1) // m * m


def ncf_kernel(eu_gmf_ref, ei_gmf_ref, eu_mlp_ref, ei_mlp_ref,
               w1u_ref, w1i_ref, b1_ref,
               w2_ref, b2_ref, w3_ref, b3_ref,
               wp_gmf_ref, wp_mlp_ref, bp_ref,
               out_ref):
    f32 = jnp.float32
    bf16 = jnp.bfloat16

    # GMF branch: elementwise product on the VPU, in f32.
    gmf = eu_gmf_ref[...].astype(f32) * ei_gmf_ref[...].astype(f32)       # (tm, L)

    # MLP layer 1 (concat-free): [eu|ei] @ W1 == eu @ W1_top + ei @ W1_bot.
    h = (jnp.dot(eu_mlp_ref[...], w1u_ref[...], preferred_element_type=f32)
         + jnp.dot(ei_mlp_ref[...], w1i_ref[...], preferred_element_type=f32)
         + b1_ref[...])
    h = jnp.maximum(h, 0.0)                                               # (tm, 4L)

    # MLP layers 2 and 3: bf16 operands into the MXU, f32 accumulation.
    h = jnp.dot(h.astype(bf16), w2_ref[...], preferred_element_type=f32) + b2_ref[...]
    h = jnp.maximum(h, 0.0)                                               # (tm, 2L)
    h = jnp.dot(h.astype(bf16), w3_ref[...], preferred_element_type=f32) + b3_ref[...]
    h = jnp.maximum(h, 0.0)                                               # (tm, L)

    # Predict layer (concat-free): split weight rows, VPU multiply + lane reduce.
    out = jnp.sum(gmf * wp_gmf_ref[...] + h * wp_mlp_ref[...],
                  axis=-1, keepdims=True) + bp_ref[...]                   # (tm, 1)
    out_ref[...] = out


def ncf_forward(user, item, params, tm=512):
    """Embedding gathers in plain JAX; tiled/pipelined fused compute in Pallas."""
    B = user.shape[0]
    L = params["embed_user_GMF"].shape[1]          # n_latent (32)
    M = params["embed_user_MLP"].shape[1]          # n_latent * 4 (128)

    # Row tile: multiple of 16 (native bf16 sublane tile); pad batch to it.
    tile = min(tm, _round_up(B, 16))
    B_pad = _round_up(B, tile)
    if B_pad != B:
        pad = B_pad - B
        user = jnp.concatenate([user, jnp.zeros((pad,), user.dtype)])
        item = jnp.concatenate([item, jnp.zeros((pad,), item.dtype)])

    # Embedding gathers (data-dependent row lookups) stay in XLA.
    eu_gmf = params["embed_user_GMF"][user]        # (B_pad, L)   bf16
    ei_gmf = params["embed_item_GMF"][item]        # (B_pad, L)   bf16
    eu_mlp = params["embed_user_MLP"][user]        # (B_pad, 4L)  bf16
    ei_mlp = params["embed_item_MLP"][item]        # (B_pad, 4L)  bf16

    grid = (B_pad // tile,)
    row = lambda i: (i, 0)       # batch-tiled operands
    rep = lambda i: (0, 0)       # weights/biases: resident across grid steps

    in_specs = [
        pl.BlockSpec((tile, L), row),      # eu_gmf
        pl.BlockSpec((tile, L), row),      # ei_gmf
        pl.BlockSpec((tile, M), row),      # eu_mlp
        pl.BlockSpec((tile, M), row),      # ei_mlp
        pl.BlockSpec((M, M), rep),         # w1u (128,128)
        pl.BlockSpec((M, M), rep),         # w1i (128,128)
        pl.BlockSpec((1, M), rep),         # b1  (1,128)
        pl.BlockSpec((M, M // 2), rep),    # w2  (128,64)
        pl.BlockSpec((1, M // 2), rep),    # b2  (1,64)
        pl.BlockSpec((M // 2, L), rep),    # w3  (64,32)
        pl.BlockSpec((1, L), rep),         # b3  (1,32)
        pl.BlockSpec((1, L), rep),         # wp_gmf_row (1,32)
        pl.BlockSpec((1, L), rep),         # wp_mlp_row (1,32)
        pl.BlockSpec((1, 1), rep),         # bp (1,1)
    ]
    out_spec = pl.BlockSpec((tile, 1), row)

    pred = pl.pallas_call(
        ncf_kernel,
        out_shape=jax.ShapeDtypeStruct((B_pad, 1), jnp.float32),
        grid=grid,
        in_specs=in_specs,
        out_specs=out_spec,
        compiler_params=pltpu.CompilerParams(
            dimension_semantics=("parallel",)),
    )(eu_gmf, ei_gmf, eu_mlp, ei_mlp,
      params["w1u"], params["w1i"], params["b1"],
      params["w2"], params["b2"], params["w3"], params["b3"],
      params["wp_gmf_row"], params["wp_mlp_row"], params["bp"])

    return pred[:B, 0]                                                    # (B,)


def init_params(key, user_num, item_num, n_latent, num_layers=3):
    """Deterministic init; shapes match the PyTorch module (NeuMF-end path)."""
    mlp_dim = n_latent * 2 ** (num_layers - 1)     # 128 per side
    ks = jax.random.split(key, 8)
    f32, bf16 = jnp.float32, jnp.bfloat16

    def xavier(k, fan_in, fan_out):
        limit = jnp.sqrt(6.0 / (fan_in + fan_out))
        # stored transposed vs PyTorch: (in, out) so kernel does x @ W
        return jax.random.uniform(k, (fan_in, fan_out), f32, -limit, limit)

    dims = [n_latent * 2 ** (num_layers - i) for i in range(num_layers)]  # 256,128,64
    w1_full = xavier(ks[4], dims[0], dims[0] // 2)                        # (256,128)
    wp_full = xavier(ks[7], 2 * n_latent, 1)                              # (64,1)

    params = {
        # Embedding tables stored bf16 (HBM-bandwidth win; kernel is mem-bound).
        "embed_user_GMF": (0.01 * jax.random.normal(ks[0], (user_num, n_latent), f32)).astype(bf16),
        "embed_item_GMF": (0.01 * jax.random.normal(ks[1], (item_num, n_latent), f32)).astype(bf16),
        "embed_user_MLP": (0.01 * jax.random.normal(ks[2], (user_num, mlp_dim), f32)).astype(bf16),
        "embed_item_MLP": (0.01 * jax.random.normal(ks[3], (item_num, mlp_dim), f32)).astype(bf16),
        # MLP weights in bf16 (MXU-native), biases in f32.
        "w1u": w1_full[:mlp_dim].astype(bf16),        # user half of layer-1 weight
        "w1i": w1_full[mlp_dim:].astype(bf16),        # item half of layer-1 weight
        "b1": jnp.zeros((1, dims[0] // 2), f32),
        "w2": xavier(ks[5], dims[1], dims[1] // 2).astype(bf16),
        "b2": jnp.zeros((1, dims[1] // 2), f32),
        "w3": xavier(ks[6], dims[2], dims[2] // 2).astype(bf16),
        "b3": jnp.zeros((1, dims[2] // 2), f32),
        # Predict layer split into GMF/MLP halves, stored as (1, L) rows (f32).
        "wp_gmf_row": wp_full[:n_latent].T,           # (1, 32)
        "wp_mlp_row": wp_full[n_latent:].T,           # (1, 32)
        "bp": jnp.zeros((1, 1), f32),
    }
    return params


def ref_forward(user, item, p):
    """Pure-JAX reference mirroring the kernel's bf16-storage / f32-accumulate math."""
    f32, bf16 = jnp.float32, jnp.bfloat16
    gmf = p["embed_user_GMF"][user].astype(f32) * p["embed_item_GMF"][item].astype(f32)
    eu = p["embed_user_MLP"][user]
    ei = p["embed_item_MLP"][item]
    h = (jnp.dot(eu, p["w1u"], preferred_element_type=f32)
         + jnp.dot(ei, p["w1i"], preferred_element_type=f32) + p["b1"])
    h = jnp.maximum(h, 0.0)
    h = jnp.maximum(jnp.dot(h.astype(bf16), p["w2"], preferred_element_type=f32) + p["b2"], 0.0)
    h = jnp.maximum(jnp.dot(h.astype(bf16), p["w3"], preferred_element_type=f32) + p["b3"], 0.0)
    return (jnp.sum(gmf * p["wp_gmf_row"] + h * p["wp_mlp_row"], axis=-1)
            + p["bp"][0, 0])


if __name__ == "__main__":
    key = jax.random.PRNGKey(0)
    user_num, item_num, n_latent, B = 100, 200, 32, 24

    pkey, ukey, ikey = jax.random.split(key, 3)
    params = init_params(pkey, user_num, item_num, n_latent)

    user = jax.random.randint(ukey, (B,), 0, user_num, dtype=jnp.int32)
    item = jax.random.randint(ikey, (B,), 0, item_num, dtype=jnp.int32)

    # Small row tile (16) so the test exercises a multi-step grid + batch padding.
    pred = ncf_forward(user, item, params, tm=16)
    jax.block_until_ready(pred)

    ref = ref_forward(user, item, params)
    assert pred.shape == (B,)
    assert jnp.allclose(pred, ref, atol=1e-4, rtol=1e-3), (
        f"max abs err {jnp.max(jnp.abs(pred - ref))}")

    print("KERNEL_OK")
</pallas_src>

<mosaic_0001>
module attributes {stable_mosaic.version = 11 : i64} {
  func.func @ncf_kernel(%arg0: i32, %arg1: memref<16x32xbf16, #tpu.memory_space<vmem>>, %arg2: memref<16x32xbf16, #tpu.memory_space<vmem>>, %arg3: memref<16x128xbf16, #tpu.memory_space<vmem>>, %arg4: memref<16x128xbf16, #tpu.memory_space<vmem>>, %arg5: memref<128x128xbf16, #tpu.memory_space<vmem>>, %arg6: memref<128x128xbf16, #tpu.memory_space<vmem>>, %arg7: memref<1x128xf32, #tpu.memory_space<vmem>>, %arg8: memref<128x64xbf16, #tpu.memory_space<vmem>>, %arg9: memref<1x64xf32, #tpu.memory_space<vmem>>, %arg10: memref<64x32xbf16, #tpu.memory_space<vmem>>, %arg11: memref<1x32xf32, #tpu.memory_space<vmem>>, %arg12: memref<1x32xf32, #tpu.memory_space<vmem>>, %arg13: memref<1x32xf32, #tpu.memory_space<vmem>>, %arg14: memref<1x1xf32, #tpu.memory_space<vmem>>, %arg15: memref<16x1xf32, #tpu.memory_space<vmem>>) attributes {dimension_semantics = [#tpu.dimension_semantics<parallel>], iteration_bounds = array<i64: 2>, scalar_prefetch = 0 : i64, scratch_operands = 0 : i64, tpu.core_type = #tpu.core_type<tc>, window_params = [{transform_indices = @transform_0, window_bounds = array<i64: 16, 32>}, {transform_indices = @transform_1, window_bounds = array<i64: 16, 32>}, {transform_indices = @transform_2, window_bounds = array<i64: 16, 128>}, {transform_indices = @transform_3, window_bounds = array<i64: 16, 128>}, {pipeline_mode = #tpu.pipeline_mode<synchronous>, transform_indices = @transform_4, window_bounds = array<i64: 128, 128>}, {pipeline_mode = #tpu.pipeline_mode<synchronous>, transform_indices = @transform_5, window_bounds = array<i64: 128, 128>}, {pipeline_mode = #tpu.pipeline_mode<synchronous>, transform_indices = @transform_6, window_bounds = array<i64: 1, 128>}, {pipeline_mode = #tpu.pipeline_mode<synchronous>, transform_indices = @transform_7, window_bounds = array<i64: 128, 64>}, {pipeline_mode = #tpu.pipeline_mode<synchronous>, transform_indices = @transform_8, window_bounds = array<i64: 1, 64>}, {pipeline_mode = #tpu.pipeline_mode<synchronous>, transform_indices = @transform_9, window_bounds = array<i64: 64, 32>}, {pipeline_mode = #tpu.pipeline_mode<synchronous>, transform_indices = @transform_10, window_bounds = array<i64: 1, 32>}, {pipeline_mode = #tpu.pipeline_mode<synchronous>, transform_indices = @transform_11, window_bounds = array<i64: 1, 32>}, {pipeline_mode = #tpu.pipeline_mode<synchronous>, transform_indices = @transform_12, window_bounds = array<i64: 1, 32>}, {pipeline_mode = #tpu.pipeline_mode<synchronous>, transform_indices = @transform_13, window_bounds = array<i64: 1, 1>}, {transform_indices = @transform_14, window_bounds = array<i64: 16, 1>}]} {
    %c0 = arith.constant 0 : index
    %c0_0 = arith.constant 0 : index
    %0 = vector.load %arg1[%c0, %c0_0] : memref<16x32xbf16, #tpu.memory_space<vmem>>, vector<16x32xbf16>
    %1 = arith.extf %0 : vector<16x32xbf16> to vector<16x32xf32>
    %c0_1 = arith.constant 0 : index
    %c0_2 = arith.constant 0 : index
    %2 = vector.load %arg2[%c0_1, %c0_2] : memref<16x32xbf16, #tpu.memory_space<vmem>>, vector<16x32xbf16>
    %3 = arith.extf %2 : vector<16x32xbf16> to vector<16x32xf32>
    %4 = arith.mulf %1, %3 : vector<16x32xf32>
    %c0_3 = arith.constant 0 : index
    %c0_4 = arith.constant 0 : index
    %5 = vector.load %arg3[%c0_3, %c0_4] : memref<16x128xbf16, #tpu.memory_space<vmem>>, vector<16x128xbf16>
    %c0_5 = arith.constant 0 : index
    %c0_6 = arith.constant 0 : index
    %6 = vector.load %arg5[%c0_5, %c0_6] : memref<128x128xbf16, #tpu.memory_space<vmem>>, vector<128x128xbf16>
    %cst = arith.constant dense<0.000000e+00> : vector<16x128xf32>
    %7 = tpu.matmul %5, %6, %cst {dimension_numbers = #tpu.dot_dimension_numbers<[1], [0], [0], [1], [0, 0, 1, 1], [], []>} : vector<16x128xbf16>, vector<128x128xbf16>, vector<16x128xf32> -> vector<16x128xf32>
    %c0_7 = arith.constant 0 : index
    %c0_8 = arith.constant 0 : index
    %8 = vector.load %arg4[%c0_7, %c0_8] : memref<16x128xbf16, #tpu.memory_space<vmem>>, vector<16x128xbf16>
    %c0_9 = arith.constant 0 : index
    %c0_10 = arith.constant 0 : index
    %9 = vector.load %arg6[%c0_9, %c0_10] : memref<128x128xbf16, #tpu.memory_space<vmem>>, vector<128x128xbf16>
    %cst_11 = arith.constant dense<0.000000e+00> : vector<16x128xf32>
    %10 = tpu.matmul %8, %9, %cst_11 {dimension_numbers = #tpu.dot_dimension_numbers<[1], [0], [0], [1], [0, 0, 1, 1], [], []>} : vector<16x128xbf16>, vector<128x128xbf16>, vector<16x128xf32> -> vector<16x128xf32>
    %11 = arith.addf %7, %10 : vector<16x128xf32>
    %c0_12 = arith.constant 0 : index
    %c0_13 = arith.constant 0 : index
    %12 = vector.load %arg7[%c0_12, %c0_13] : memref<1x128xf32, #tpu.memory_space<vmem>>, vector<1x128xf32>
    %13 = vector.broadcast %12 : vector<1x128xf32> to vector<16x128xf32>
    %14 = arith.addf %11, %13 : vector<16x128xf32>
    %cst_14 = arith.constant 0.000000e+00 : f32
    %15 = vector.broadcast %cst_14 : f32 to vector<16x128xf32>
    %16 = arith.maximumf %14, %15 : vector<16x128xf32>
    %17 = arith.truncf %16 : vector<16x128xf32> to vector<16x128xbf16>
    %c0_15 = arith.constant 0 : index
    %c0_16 = arith.constant 0 : index
    %18 = vector.load %arg8[%c0_15, %c0_16] : memref<128x64xbf16, #tpu.memory_space<vmem>>, vector<128x64xbf16>
    %cst_17 = arith.constant dense<0.000000e+00> : vector<16x64xf32>
    %19 = tpu.matmul %17, %18, %cst_17 {dimension_numbers = #tpu.dot_dimension_numbers<[1], [0], [0], [1], [0, 0, 1, 1], [], []>} : vector<16x128xbf16>, vector<128x64xbf16>, vector<16x64xf32> -> vector<16x64xf32>
    %c0_18 = arith.constant 0 : index
    %c0_19 = arith.constant 0 : index
    %20 = vector.load %arg9[%c0_18, %c0_19] : memref<1x64xf32, #tpu.memory_space<vmem>>, vector<1x64xf32>
    %21 = vector.broadcast %20 : vector<1x64xf32> to vector<16x64xf32>
    %22 = arith.addf %19, %21 : vector<16x64xf32>
    %cst_20 = arith.constant 0.000000e+00 : f32
    %23 = vector.broadcast %cst_20 : f32 to vector<16x64xf32>
    %24 = arith.maximumf %22, %23 : vector<16x64xf32>
    %25 = arith.truncf %24 : vector<16x64xf32> to vector<16x64xbf16>
    %c0_21 = arith.constant 0 : index
    %c0_22 = arith.constant 0 : index
    %26 = vector.load %arg10[%c0_21, %c0_22] : memref<64x32xbf16, #tpu.memory_space<vmem>>, vector<64x32xbf16>
    %cst_23 = arith.constant dense<0.000000e+00> : vector<16x32xf32>
    %27 = tpu.matmul %25, %26, %cst_23 {dimension_numbers = #tpu.dot_dimension_numbers<[1], [0], [0], [1], [0, 0, 1, 1], [], []>} : vector<16x64xbf16>, vector<64x32xbf16>, vector<16x32xf32> -> vector<16x32xf32>
    %c0_24 = arith.constant 0 : index
    %c0_25 = arith.constant 0 : index
    %28 = vector.load %arg11[%c0_24, %c0_25] : memref<1x32xf32, #tpu.memory_space<vmem>>, vector<1x32xf32>
    %29 = vector.broadcast %28 : vector<1x32xf32> to vector<16x32xf32>
    %30 = arith.addf %27, %29 : vector<16x32xf32>
    %cst_26 = arith.constant 0.000000e+00 : f32
    %31 = vector.broadcast %cst_26 : f32 to vector<16x32xf32>
    %32 = arith.maximumf %30, %31 : vector<16x32xf32>
    %c0_27 = arith.constant 0 : index
    %c0_28 = arith.constant 0 : index
    %33 = vector.load %arg12[%c0_27, %c0_28] : memref<1x32xf32, #tpu.memory_space<vmem>>, vector<1x32xf32>
    %34 = vector.broadcast %33 : vector<1x32xf32> to vector<16x32xf32>
    %35 = arith.mulf %4, %34 : vector<16x32xf32>
    %c0_29 = arith.constant 0 : index
    %c0_30 = arith.constant 0 : index
    %36 = vector.load %arg13[%c0_29, %c0_30] : memref<1x32xf32, #tpu.memory_space<vmem>>, vector<1x32xf32>
    %37 = vector.broadcast %36 : vector<1x32xf32> to vector<16x32xf32>
    %38 = arith.mulf %32, %37 : vector<16x32xf32>
    %39 = arith.addf %35, %38 : vector<16x32xf32>
    %cst_31 = arith.constant dense<0.000000e+00> : vector<16xf32>
    %40 = vector.multi_reduction <add>, %39, %cst_31 [1] : vector<16x32xf32> to vector<16xf32>
    %41 = vector.shape_cast %40 : vector<16xf32> to vector<16x1xf32>
    %c0_32 = arith.constant 0 : index
    %c0_33 = arith.constant 0 : index
    %42 = vector.load %arg14[%c0_32, %c0_33] : memref<1x1xf32, #tpu.memory_space<vmem>>, vector<1x1xf32>
    %43 = vector.broadcast %42 : vector<1x1xf32> to vector<16x1xf32>
    %44 = arith.addf %41, %43 : vector<16x1xf32>
    %c0_34 = arith.constant 0 : index
    %c0_35 = arith.constant 0 : index
    %45 = vector.load %arg15[%c0_34, %c0_35] : memref<16x1xf32, #tpu.memory_space<vmem>>, vector<16x1xf32>
    tpu.vector_store %arg15[%c0_34, %c0_35], %44 {strides = array<i32>} : memref<16x1xf32, #tpu.memory_space<vmem>>, vector<16x1xf32>,
    return
  }
  func.func @transform_0(%arg0: i32) -> (i32, i32) {
    %c0_i32 = arith.constant 0 : i32
    %c0_i32_0 = arith.constant 0 : i32
    return %arg0, %c0_i32 : i32, i32
  }
  func.func @transform_1(%arg0: i32) -> (i32, i32) {
    %c0_i32 = arith.constant 0 : i32
    %c0_i32_0 = arith.constant 0 : i32
    return %arg0, %c0_i32 : i32, i32
  }
  func.func @transform_2(%arg0: i32) -> (i32, i32) {
    %c0_i32 = arith.constant 0 : i32
    %c0_i32_0 = arith.constant 0 : i32
    return %arg0, %c0_i32 : i32, i32
  }
  func.func @transform_3(%arg0: i32) -> (i32, i32) {
    %c0_i32 = arith.constant 0 : i32
    %c0_i32_0 = arith.constant 0 : i32
    return %arg0, %c0_i32 : i32, i32
  }
  func.func @transform_4(%arg0: i32) -> (i32, i32) {
    %c0_i32 = arith.constant 0 : i32
    %c0_i32_0 = arith.constant 0 : i32
    %c0_i32_1 = arith.constant 0 : i32
    return %c0_i32, %c0_i32_0 : i32, i32
  }
  func.func @transform_5(%arg0: i32) -> (i32, i32) {
    %c0_i32 = arith.constant 0 : i32
    %c0_i32_0 = arith.constant 0 : i32
    %c0_i32_1 = arith.constant 0 : i32
    return %c0_i32, %c0_i32_0 : i32, i32
  }
  func.func @transform_6(%arg0: i32) -> (i32, i32) {
    %c0_i32 = arith.constant 0 : i32
    %c0_i32_0 = arith.constant 0 : i32
    %c0_i32_1 = arith.constant 0 : i32
    return %c0_i32, %c0_i32_0 : i32, i32
  }
  func.func @transform_7(%arg0: i32) -> (i32, i32) {
    %c0_i32 = arith.constant 0 : i32
    %c0_i32_0 = arith.constant 0 : i32
    %c0_i32_1 = arith.constant 0 : i32
    return %c0_i32, %c0_i32_0 : i32, i32
  }
  func.func @transform_8(%arg0: i32) -> (i32, i32) {
    %c0_i32 = arith.constant 0 : i32
    %c0_i32_0 = arith.constant 0 : i32
    %c0_i32_1 = arith.constant 0 : i32
    return %c0_i32, %c0_i32_0 : i32, i32
  }
  func.func @transform_9(%arg0: i32) -> (i32, i32) {
    %c0_i32 = arith.constant 0 : i32
    %c0_i32_0 = arith.constant 0 : i32
    %c0_i32_1 = arith.constant 0 : i32
    return %c0_i32, %c0_i32_0 : i32, i32
  }
  func.func @transform_10(%arg0: i32) -> (i32, i32) {
    %c0_i32 = arith.constant 0 : i32
    %c0_i32_0 = arith.constant 0 : i32
    %c0_i32_1 = arith.constant 0 : i32
    return %c0_i32, %c0_i32_0 : i32, i32
  }
  func.func @transform_11(%arg0: i32) -> (i32, i32) {
    %c0_i32 = arith.constant 0 : i32
    %c0_i32_0 = arith.constant 0 : i32
    %c0_i32_1 = arith.constant 0 : i32
    return %c0_i32, %c0_i32_0 : i32, i32
  }
  func.func @transform_12(%arg0: i32) -> (i32, i32) {
    %c0_i32 = arith.constant 0 : i32
    %c0_i32_0 = arith.constant 0 : i32
    %c0_i32_1 = arith.constant 0 : i32
    return %c0_i32, %c0_i32_0 : i32, i32
  }
  func.func @transform_13(%arg0: i32) -> (i32, i32) {
    %c0_i32 = arith.constant 0 : i32
    %c0_i32_0 = arith.constant 0 : i32
    %c0_i32_1 = arith.constant 0 : i32
    return %c0_i32, %c0_i32_0 : i32, i32
  }
  func.func @transform_14(%arg0: i32) -> (i32, i32) {
    %c0_i32 = arith.constant 0 : i32
    %c0_i32_0 = arith.constant 0 : i32
    return %arg0, %c0_i32 : i32, i32
  }
}

</mosaic_0001>

<bundles_post_ra>
// kernel: tpu_custom_call.1
= control target key start
LH: loop header
LB: loop body
LE: loop exit
PB: predicated region body
PF: predicated region fallthrough
CT: control target
= control target key end

     0   :  { %s2144_s0 = inlined_call_operand.hbm [shape: bf16[32,32], index: 0, kind: input, shape index: {}]   ;;  %s2145_s1 = inlined_call_operand.hbm [shape: bf16[32,32], index: 1, kind: input, shape index: {}]   ;;  %s2146_s2 = inlined_call_operand.hbm [shape: bf16[32,128], index: 2, kind: input, shape index: {}]   ;;  %s2147_s3 = inlined_call_operand.hbm [shape: bf16[32,128], index: 3, kind: input, shape index: {}]   ;;  %s2148_s4 = inlined_call_operand.vmem [shape: bf16[128,128], index: 4, kind: input, shape index: {}]   ;;  %s2149_s5 = inlined_call_operand.vmem [shape: bf16[128,128], index: 5, kind: input, shape index: {}]   ;;  %s2150_s6 = inlined_call_operand.vmem [shape: f32[1,128], index: 6, kind: input, shape index: {}]   ;;  %s2151_s7 = inlined_call_operand.vmem [shape: bf16[128,64], index: 7, kind: input, shape index: {}]   ;;  %s2152_s8 = inlined_call_operand.vmem [shape: f32[1,64], index: 8, kind: input, shape index: {}]   ;;  %s2153_s9 = inlined_call_operand.vmem [shape: bf16[64,32], index: 9, kind: input, shape index: {}]   ;;  %s2154_s10 = inlined_call_operand.vmem [shape: f32[1,32], index: 10, kind: input, shape index: {}]   ;;  %s2155_s11 = inlined_call_operand.vmem [shape: f32[1,32], index: 11, kind: input, shape index: {}]   ;;  %s2156_s12 = inlined_call_operand.vmem [shape: f32[1,32], index: 12, kind: input, shape index: {}]   ;;  %s2157_s13 = inlined_call_operand.<no memory space> [shape: f32[1,1], index: 13, kind: input, shape index: {}]   ;;  %s2158_s14 = inlined_call_operand.vmem [shape: f32[32,1], index: 14, kind: output, shape index: {}]  }
   0x1   :  { %2167 = sst [smem:[#allocation16_spill]] %s2144_s0  ;;  %v19_v0 = vstv %s2157_s13 }
   0x2   :  { %2168 = sst [smem:[#allocation17_spill]] %s2145_s1  ;;  %20 = vst [vmem:[#allocation2] sm:$0x1] %v19_v0 }
   0x3   :  { %2169 = sst [smem:[#allocation18_spill]] %s2152_s8 }
   0x4   :  { %2170 = sst [smem:[#allocation19_spill]] %s2154_s10 }
   0x5   :  { %2171 = sst [smem:[#allocation20_spill]] %s2155_s11 }
   0x6   :  { %2172 = sst [smem:[#allocation21_spill]] %s2156_s12 }
   0x7   :  { %2173 = sst [smem:[#allocation22_spill]] %s2158_s14 }
   0x8   :  { %21 = vsyncpa [#allocation4], 0 }
   0x9   :  { %23 = vsyncpa [#allocation4 + $0x1], 0 }
   0xa   :  { %24 = vsyncpa [#allocation6], 0 }
   0xb   :  { %26 = vsyncpa [#allocation6 + $0x1], 0 }
   0xc   :  { %27 = vsyncpa [#allocation9], 0 }
   0xd   :  { %29 = vsyncpa [#allocation9 + $0x1], 0  ;;  %s1750_s15 = smov 0   ;;  %s1752_s16 = smov 0  }
   0xe   :  { %s1754_s17 = smov 0   ;;  %s1756_s18 = smov 0  }
   0xf LB: > { %2174 = sst [smem:[#allocation13_spill]] %s1658_s17  ;;  %s1769_s13 = sadd.s32 4294967295, %s1662_s18   ;;  %s1662_s18 = sphi %s1756_s18, %s2194_s18   ;;  %s1658_s17 = sphi %s1754_s17, %s2196_s17   ;;  %s1654_s16 = sphi %s1752_s16, %s2198_s16   ;;  %s1650_s15 = sphi %s1750_s15, %s2197_s15  }
  0x10   : > { %s1772_s19 = sadd.s32 1, %s1662_s18   ;;  %s42_s21 = sadd.s32 1, %s1658_s17 }
  0x11   : > { %2175 = sst [smem:[#allocation14_spill]] %s1772_s19  ;;  %s39_s20 = ssub.s32 %s1662_s18, %s1772_s19 }
  0x12   : > { %p40_p0 = scmp.eq.s32.totalorder %s39_s20, 0  ;;  %p49_p1 = scmp.ne.s32.totalorder %s1658_s17, %s1654_s16 }
  0x13   : > { %p50_p2 = scmp.eq.s32.totalorder %s1662_s18, 0  ;;  %p55_p3 = scmp.ne.s32.totalorder %s1654_s16, %s1650_s15 }
  0x14   : > { %s1782_s22 = scalar_select %p40_p0, %s1658_s17, %s42_s21  }
  0x15   : > { %p51_p4 = por %p50_p2, %p49_p1  ;;  %p56_p5 = scmp.eq.s32.totalorder %s1769_s13, 0 }
  0x16   : > { %2176 = sst [smem:[#allocation15_spill]] %s1782_s22  ;;  %p1433_p6 = scmp.lt.s32.totalorder %s1662_s18, 2 }
  0x17   : > { %p1786_p7 = por %p56_p5, %p55_p3  ;;  %s1791_s24 = sand.u32 1, %s1658_s17  }
  0x18   : > { %s1794_s25 = sshll.u32 %s1791_s24, 3  ;;  %s1797_s26 = sshll.u32 %s1662_s18, 7 }
  0x19   : > { %s2177_s23 = scalar_select %p1786_p7, 1, 0 }
  0x1a   : > { %p1799_p8 = pnand %p1433_p6, %p51_p4  ;;  %s444_s28 = sand.u32 1, %s1662_s18  }
  0x1b   : > { %s2179_s1 = sld [smem:[#allocation17_spill]]  ;;  %s448_s20 = scalar_lea.vmem [#allocation5], %s1794_s25 }
  0x1c   : > { %s455_s21 = sshll.u32 %s448_s20, 4  ;;  %s1815_s22 = scalar_lea.sflag [#allocation6], %s444_s28  ;;  %s1812_s21 = int_to_ptr.vmem [resolvable:$true] %s455_s21 }
  0x1d   : > { %p1821_p12 = pneg %p1799_p8 }
  0x21   : > { %s1808_s15 = scalar_lea.hbm %s2179_s1, %s1797_s26  ;;  %s1505_s20 = scalar_lea.hbm %s2179_s1, 256 }
  0x22   : > { %s1500_s17 = scalar_lea.hbm %s1808_s15, 128  ;;  %p1506_p1 = scmp.lt.u32.totalorder %s1808_s15, %s2179_s1 }
  0x23   : > { %p1501_p11 = scmp.ne.s32.totalorder %s1808_s15, %s1500_s17  ;;  %p1507_p2 = scmp.lt.u32.totalorder %s1505_s20, %s1500_s17 }
  0x24   : > { %p1509_p4 = scmp.lt.u32.totalorder %s1500_s17, %s1808_s15 }
  0x25   : > { %p1503_p13 = pnand %p1821_p12, %p1501_p11  ;;  %p1508_p3 = por %p1507_p2, %p1506_p1 }
  0x27   : > { %p1504_p0 = pneg %p1503_p13  ;;  %p1510_p5 = por %p1509_p4, %p1508_p3 }
  0x29   : > { %p1511_p6 = pnand %p1510_p5, %p1504_p0 }
  0x2b   : > { %1514 = shalt.err (!%p1511_p6)
}
  0x2c   : > { %s1515_s28 = scalar_lea.vmem %s1812_s21, 128  ;;  %s1664_s29 = smov [#allocation5]  }
  0x2d   : > { %p1516_p11 = scmp.ne.s32.totalorder %s1812_s21, %s1515_s28  ;;  %s1520_s30 = sshll.u32 %s1664_s29, 4  ;;  %s1521_s30 = int_to_ptr.vmem [resolvable:$false] %s1520_s30 }
  0x2e   : > { %s1522_s12 = scalar_lea.vmem %s1521_s30, 256  ;;  %p1523_p10 = scmp.lt.s32.totalorder %s1812_s21, %s1521_s30 }
  0x2f   : > { %p1518_p13 = pnand %p1516_p11, %p1821_p12  ;;  %p1524_p7 = scmp.lt.s32.totalorder %s1522_s12, %s1515_s28 }
  0x31   : > { %p1519_p9 = pneg %p1518_p13  ;;  %p1525_p1 = por %p1524_p7, %p1523_p10 }
  0x33   : > { %p1526_p2 = pnand %p1525_p1, %p1519_p9 }
  0x35   : > { %1529 = shalt.err (!%p1526_p2)
}
  0x36   : > { %s2163_s14 = smov 64   ;;  %s2165_s17 = smov 4  }
  0x37   : > { %1426 = dma.hbm_to_vmem [thread:$0]  (!%p1799_p8), %s1808_s15, 128, %s1812_s21, %s1815_s22, %s2163_s14, %s2163_s14, %s2165_s17  }
  0x38   : > { %p2181_p7 = scmp.lt.s32.totalorder %s1662_s18, 3  ;;  %p2182_p9 = scmp.ge.s32.totalorder %s1662_s18, 1 }
  0x39   : > { %s2184_s0 = sld [smem:[#allocation16_spill]]  ;;  %s427_s12 = scalar_lea.vmem [#allocation3], %s1794_s25 }
  0x3a   : > { %p1852_p10 = pnand %p2182_p9, %p2181_p7  ;;  %s434_s1 = sshll.u32 %s427_s12, 4  ;;  %s1863_s1 = int_to_ptr.vmem [resolvable:$true] %s434_s1 }
  0x3b   : > { %s1869_s18 = scalar_lea.hbm %s2146_s2, %s1797_s26  ;;  %s424_s14 = scalar_lea.sflag [#allocation4], %s1791_s24 }
  0x3c   : > { %s2183_s20 = scalar_select %p1852_p10, 1, 0 }
  0x3f   : > { %s1860_s30 = scalar_lea.hbm %s2184_s0, %s1797_s26  ;;  %s1535_s11 = scalar_lea.hbm %s2184_s0, 256 }
  0x40   : > { %s1530_s17 = scalar_lea.hbm %s1860_s30, 128  ;;  %p1536_p5 = scmp.lt.u32.totalorder %s1860_s30, %s2184_s0 }
  0x41   : > { %p1531_p0 = scmp.ne.s32.totalorder %s1860_s30, %s1530_s17  ;;  %p1537_p6 = scmp.lt.u32.totalorder %s1535_s11, %s1530_s17 }
  0x42   : > { %p1539_p13 = scmp.lt.u32.totalorder %s1530_s17, %s1860_s30 }
  0x43   : > { %p1533_p3 = pnand %p1531_p0, %p1821_p12  ;;  %p1538_p11 = por %p1537_p6, %p1536_p5 }
  0x45   : > { %p1534_p4 = pneg %p1533_p3  ;;  %p1540_p1 = por %p1539_p13, %p1538_p11 }
  0x47   : > { %p1541_p2 = pnand %p1540_p1, %p1534_p4 }
  0x49   : > { %1544 = shalt.err (!%p1541_p2)
}
  0x4a   : > { %s1545_s12 = scalar_lea.vmem %s1863_s1, 128  ;;  %s1667_s15 = smov [#allocation3]  }
  0x4b   : > { %p1546_p7 = scmp.ne.s32.totalorder %s1863_s1, %s1545_s12  ;;  %s1550_s21 = sshll.u32 %s1667_s15, 4  ;;  %s1551_s21 = int_to_ptr.vmem [resolvable:$false] %s1550_s21 }
  0x4c   : > { %s1552_s8 = scalar_lea.vmem %s1551_s21, 256  ;;  %p1553_p3 = scmp.lt.s32.totalorder %s1863_s1, %s1551_s21 }
  0x4d   : > { %p1548_p9 = pnand %p1546_p7, %p1821_p12  ;;  %p1554_p10 = scmp.lt.s32.totalorder %s1552_s8, %s1545_s12 }
  0x4f   : > { %p1549_p0 = pneg %p1548_p9  ;;  %p1555_p5 = por %p1554_p10, %p1553_p3 }
  0x51   : > { %p1556_p6 = pnand %p1555_p5, %p1549_p0 }
  0x53   : > { %1559 = shalt.err (!%p1556_p6)
}
  0x54   : > { %s2185_s10 = smov 4   ;;  %s2186_s11 = smov 64  }
  0x55   : > { %1423 = dma.hbm_to_vmem [thread:$0]  (!%p1799_p8), %s1860_s30, 128, %s1863_s1, %s424_s14, %s2186_s11, %s2186_s11, %s2185_s10  }
  0x56   : > { %s469_s17 = scalar_lea.vmem [#allocation7], %s1794_s25  ;;  %s1560_s29 = scalar_lea.hbm %s1869_s18, 128 }
  0x57   : > { %s476_s28 = sshll.u32 %s469_s17, 4  ;;  %p1561_p10 = scmp.ne.s32.totalorder %s1869_s18, %s1560_s29  ;;  %s1899_s28 = int_to_ptr.vmem [resolvable:$true] %s476_s28 }
  0x58   : > { %s1565_s21 = scalar_lea.hbm %s2146_s2, 256  ;;  %p1566_p13 = scmp.lt.u32.totalorder %s1869_s18, %s2146_s2 }
  0x59   : > { %p1563_p4 = pnand %p1561_p10, %p1821_p12  ;;  %p1567_p1 = scmp.lt.u32.totalorder %s1565_s21, %s1560_s29 }
  0x5a   : > { %p1569_p7 = scmp.lt.u32.totalorder %s1560_s29, %s1869_s18 }
  0x5b   : > { %p1564_p11 = pneg %p1563_p4  ;;  %p1568_p2 = por %p1567_p1, %p1566_p13 }
  0x5d   : > { %p1570_p9 = por %p1569_p7, %p1568_p2 }
  0x5f   : > { %p1571_p0 = pnand %p1570_p9, %p1564_p11 }
  0x61   : > { %1574 = shalt.err (!%p1571_p0)
}
  0x62   : > { %s1575_s1 = scalar_lea.vmem %s1899_s28, 128  ;;  %s1668_s14 = smov [#allocation7]  }
  0x63   : > { %p1576_p3 = scmp.ne.s32.totalorder %s1899_s28, %s1575_s1  ;;  %s1580_s30 = sshll.u32 %s1668_s14, 4  ;;  %s1581_s30 = int_to_ptr.vmem [resolvable:$false] %s1580_s30 }
  0x64   : > { %s1582_s0 = scalar_lea.vmem %s1581_s30, 256  ;;  %p1583_p10 = scmp.lt.s32.totalorder %s1899_s28, %s1581_s30 }
  0x65   : > { %p1578_p5 = pnand %p1576_p3, %p1821_p12  ;;  %p1584_p4 = scmp.lt.s32.totalorder %s1582_s0, %s1575_s1 }
  0x67   : > { %p1579_p6 = pneg %p1578_p5  ;;  %p1585_p13 = por %p1584_p4, %p1583_p10 }
  0x69   : > { %p1586_p1 = pnand %p1585_p13, %p1579_p6 }
  0x6b   : > { %1589 = shalt.err (!%p1586_p1)
}
  0x6c   : > { %1429 = dma.hbm_to_vmem [thread:$0]  (!%p1799_p8), %s1869_s18, 128, %s1899_s28, %s1815_s22, %s2186_s11, %s2186_s11, %s2185_s10  }
  0x6d   : > { %s1930_s12 = scalar_lea.hbm %s2147_s3, %s1797_s26  ;;  %s490_s15 = scalar_lea.vmem [#allocation8], %s1794_s25 }
  0x6e   : > { %s497_s21 = sshll.u32 %s490_s15, 4  ;;  %s487_s8 = scalar_lea.sflag [#allocation9], %s1791_s24  ;;  %s1933_s21 = int_to_ptr.vmem [resolvable:$true] %s497_s21 }
  0x6f   : > { %s1590_s1 = scalar_lea.hbm %s1930_s12, 128  ;;  %s1595_s28 = scalar_lea.hbm %s2147_s3, 256 }
  0x70   : > { %p1591_p11 = scmp.ne.s32.totalorder %s1930_s12, %s1590_s1  ;;  %p1596_p9 = scmp.lt.u32.totalorder %s1930_s12, %s2147_s3 }
  0x71   : > { %p1597_p0 = scmp.lt.u32.totalorder %s1595_s28, %s1590_s1  ;;  %p1599_p5 = scmp.lt.u32.totalorder %s1590_s1, %s1930_s12 }
  0x72   : > { %p1593_p2 = pnand %p1591_p11, %p1821_p12 }
  0x73   : > { %p1598_p3 = por %p1597_p0, %p1596_p9 }
  0x74   : > { %p1594_p7 = pneg %p1593_p2 }
  0x75   : > { %p1600_p6 = por %p1599_p5, %p1598_p3 }
  0x77   : > { %p1601_p10 = pnand %p1600_p6, %p1594_p7 }
  0x79   : > { %1604 = shalt.err (!%p1601_p10)
}
  0x7a   : > { %s1605_s25 = scalar_lea.vmem %s1933_s21, 128  ;;  %s1669_s30 = smov [#allocation8]  }
  0x7b   : > { %p1606_p4 = scmp.ne.s32.totalorder %s1933_s21, %s1605_s25  ;;  %s1610_s0 = sshll.u32 %s1669_s30, 4  ;;  %s1611_s0 = int_to_ptr.vmem [resolvable:$false] %s1610_s0 }
  0x7c   : > { %s1612_s17 = scalar_lea.vmem %s1611_s0, 256  ;;  %p1613_p11 = scmp.lt.s32.totalorder %s1933_s21, %s1611_s0 }
  0x7d   : > { %p1608_p13 = pnand %p1606_p4, %p1821_p12  ;;  %p1614_p2 = scmp.lt.s32.totalorder %s1612_s17, %s1605_s25 }
  0x7f   : > { %p1609_p1 = pneg %p1608_p13  ;;  %p1615_p9 = por %p1614_p2, %p1613_p11 }
  0x81   : > { %p1616_p0 = pnand %p1615_p9, %p1609_p1 }
  0x83   : > { %1619 = shalt.err (!%p1616_p0)
}
  0x84   : > { %1432 = dma.hbm_to_vmem [thread:$0]  (!%p1799_p8), %s1930_s12, 128, %s1933_s21, %s487_s8, %s2186_s11, %s2186_s11, %s2185_s10  }
  0x85   : > { %p2187_p12 = scmp.ne.s32.totalorder %s2183_s20, 0 }
  0x86   : > { %s511_s19 = sand.u32 (!%p2187_p12), 1, %s1654_s16   ;;  %p2188_p7 = scmp.ne.s32.totalorder (!%p2187_p12), %s2177_s23, 0 }
  0x87   : > { %509 = sbr.rel (%p2187_p12) target bundleno = 995 (0x3e3), region = 76  ;;  %s1965_s29 = sshll.u32 (!%p2187_p12), %s511_s19, 3 }
  0x88   : > { %s512_s15 = scalar_lea.sflag (!%p2187_p12), [#allocation4], %s511_s19  ;;  %s515_s1 = scalar_lea.vmem (!%p2187_p12), [#allocation3], %s1965_s29 }
  0x8e   : > { %1637 = dma.done.wait (%p2188_p7), %s512_s15, 128  }
  0x8f   : > { %1639 = vsyncadd (%p2188_p7), %s512_s15, 4294967168  ;;  %s520_s24 = sand.u32 1, %s1769_s13   ;;  %s524_s20 = scalar_lea.vmem [#allocation5], %s1965_s29 }
  0x90   : > { %s521_s27 = scalar_lea.sflag [#allocation6], %s520_s24 }
  0x91   : > { %1641 = dma.done.wait (%p2188_p7), %s521_s27, 256  }
  0x92   : > { %1643 = vsyncadd (%p2188_p7), %s521_s27, 4294967040  ;;  %s533_s10 = scalar_lea.vmem [#allocation7], %s1965_s29  ;;  %s539_s11 = scalar_lea.sflag [#allocation9], %s511_s19 }
  0x93   : > { %s542_s12 = scalar_lea.vmem [#allocation8], %s1965_s29 }
  0x94   : > { %1645 = dma.done.wait (%p2188_p7), %s539_s11, 128  }
  0x95   : > { %1647 = vsyncadd (%p2188_p7), %s539_s11, 4294967168  ;;  %v1670_v1 = vmov 0.0   ;;  %vm1671_vm0 = vmmov 0   ;;  %v1470_v2 = vld [vmem:[%s2149_s5] sm:$0xff]   ;;  %v1472_v4 = vld [vmem:[%s2149_s5 + $0x8] sm:$0xff]   ;;  %s2189_s28 = sld [smem:[#allocation18_spill]] }
  0x96   : > { %1340 = vmatprep.subr.bf16.mxu0 %v1670_v1  ;;  %1360 = vmatprep.subr.bf16.mxu1 %v1670_v1  ;;  %v1471_v3 = vld [vmem:[%s2148_s4] sm:$0xff]   ;;  %v1473_v5 = vld [vmem:[%s2148_s4 + $0x8] sm:$0xff]   ;;  %v1474_v6 = vld [vmem:[%s2149_s5 + $0x10] sm:$0xff]   ;;  %vm1015_vm1 = vcmask 523264   ;;  %s2190_s25 = sld [smem:[#allocation19_spill]]  ;;  %s2191_s17 = sld [smem:[#allocation20_spill]] }
  0x97   : > { %1356 = vmatprep.mubr.msk.bf16.mxu0 %vm1671_vm0, %v1670_v1  ;;  %1376 = vmatprep.mubr.msk.bf16.mxu1 %vm1671_vm0, %v1670_v1  ;;  %v1475_v7 = vld [vmem:[%s2148_s4 + $0x10] sm:$0xff]   ;;  %v1476_v8 = vld [vmem:[%s2149_s5 + $0x18] sm:$0xff]   ;;  %v1478_v10 = vld [vmem:[%s2149_s5 + $0x20] sm:$0xff]   ;;  %vm1082_vm2 = vcmask 261120   ;;  %s1255_s19 = sshll.u32 %s1769_s13, 1  ;;  %s2193_s11 = sld [smem:[#allocation22_spill]] }
  0x98   : > { %1341 = vmatpush3.bf16.msra.mxu0 %v1470_v2  ;;  %1361 = vmatpush3.bf16.msra.mxu1 %v1471_v3  ;;  %v1477_v9 = vld [vmem:[%s2148_s4 + $0x18] sm:$0xff]   ;;  %v1479_v11 = vld [vmem:[%s2148_s4 + $0x20] sm:$0xff]   ;;  %v1480_v12 = vld [vmem:[%s2149_s5 + $0x28] sm:$0xff]   ;;  %p607_p8 = scmp.lt.s32.totalorder %s1255_s19, 3  ;;  %vm1098_vm3 = vcmask 7168  }
  0x99   : > { %1342 = vmatprep.subr.bf16.mxu0 %v1670_v1  ;;  %1362 = vmatprep.subr.bf16.mxu1 %v1670_v1  ;;  %v1481_v13 = vld [vmem:[%s2148_s4 + $0x28] sm:$0xff]   ;;  %v1482_v14 = vld [vmem:[%s2149_s5 + $0x30] sm:$0xff]   ;;  %v1484_v16 = vld [vmem:[%s2149_s5 + $0x38] sm:$0xff]  }
  0x9a   : > { %v1483_v15 = vld [vmem:[%s2148_s4 + $0x30] sm:$0xff]   ;;  %v1485_v17 = vld [vmem:[%s2148_s4 + $0x38] sm:$0xff]   ;;  %v1488_v20 = vld [vmem:[%s2151_s7] sm:$0xff]   ;;  %s2200_s19 = smov (!%p607_p8, %s1255_s19), 3 }
  0x9b   : > { %v1486_v18 = vld [vmem:[%s542_s12] sm:$0xff]   ;;  %v1487_v19 = vld [vmem:[%s533_s10] sm:$0xff]   ;;  %s1256_s15 = sshll.u32 %s2200_s19, 3 }
  0x9c   : > { %1343 = vmatpush3.bf16.msra.mxu0 %v1472_v4  ;;  %1363 = vmatpush3.bf16.msra.mxu1 %v1473_v5  ;;  %v1489_v21 = vld [vmem:[%s2151_s7 + $0x8] sm:$0xff]   ;;  %v1490_v22 = vld [vmem:[%s2151_s7 + $0x10] sm:$0xff]   ;;  %v1491_v23 = vld [vmem:[%s2151_s7 + $0x18] sm:$0xff]  }
  0x9d   : > { %1344 = vmatprep.subr.bf16.mxu0 %v1670_v1  ;;  %1364 = vmatprep.subr.bf16.mxu1 %v1670_v1  ;;  %v1492_v24 = vld [vmem:[%s2151_s7 + $0x20] sm:$0xff]   ;;  %v1493_v25 = vld [vmem:[%s2151_s7 + $0x28] sm:$0xff]   ;;  %v1494_v26 = vld [vmem:[%s2151_s7 + $0x30] sm:$0xff]   ;;  %s610_s21 = scalar_lea.vmem %s2193_s11, %s1256_s15 }
  0x9e   : > { %v1495_v27 = vld [vmem:[%s2151_s7 + $0x38] sm:$0xff]   ;;  %v1496_v28 = vld [vmem:[%s2153_s9] sm:$0xff]   ;;  %v1497_v29 = vld [vmem:[%s2153_s9 + $0x8] sm:$0xff]  }
  0x9f   : > { %v1275_v32 = vld [vmem:[%s2150_s6] ss:$0 sm:$0xff]  ;;  %v1498_v46 = vld [vmem:[%s2153_s9 + $0x10] sm:$0xff]   ;;  %v1499_v47 = vld [vmem:[%s2153_s9 + $0x18] sm:$0xff]  }
  0xa0   : > { %1345 = vmatpush3.bf16.msra.mxu0 %v1474_v6  ;;  %1365 = vmatpush3.bf16.msra.mxu1 %v1475_v7  ;;  %v1276_v48 = vld [vmem:[%s2189_s28] ss:$0 sm:$0xff]  ;;  %v1301_v58 = vld [vmem:[%s515_s1] sm:$0xff]  }
  0xa1   : > { %1346 = vmatprep.subr.bf16.mxu0 %v1670_v1  ;;  %1366 = vmatprep.subr.bf16.mxu1 %v1670_v1  ;;  %v1305_v59 = vld [vmem:[%s524_s20] sm:$0xff]   ;;  %v1302_v60 = vunpack.c.l.bf16 %v1301_v58  ;;  %v1303_v62 = vunpack.c.h.bf16 %v1301_v58  ;;  %s2192_s20 = sld [smem:[#allocation21_spill]] }
  0xa2   : > { %v1306_v61 = vunpack.c.l.bf16 %v1305_v59  ;;  %v1307_v63 = vunpack.c.h.bf16 %v1305_v59  ;;  %v1285_v0 = vld [vmem:[%s2190_s25] ss:$0 sm:$0xff] }
  0xa3   : > { %v1291_v3 = vld [vmem:[%s2191_s17] ss:$0 sm:$0xff] }
  0xa4   : > { %1347 = vmatpush3.bf16.msra.mxu0 %v1476_v8  ;;  %1367 = vmatpush3.bf16.msra.mxu1 %v1477_v9  ;;  %v622_v6 = vmul.f32 %v1307_v63, %v1303_v62 }
  0xa5   : > { %1348 = vmatprep.subr.bf16.mxu0 %v1670_v1  ;;  %1368 = vmatprep.subr.bf16.mxu1 %v1670_v1 }
  0xa7   : > { %v1292_v7 = vld [vmem:[%s2192_s20] ss:$0 sm:$0xff] }
  0xa8   : > { %1349 = vmatpush3.bf16.msra.mxu0 %v1478_v10  ;;  %1369 = vmatpush3.bf16.msra.mxu1 %v1479_v11 }
  0xa9   : > { %1350 = vmatprep.subr.bf16.mxu0 %v1670_v1  ;;  %1370 = vmatprep.subr.bf16.mxu1 %v1670_v1 }
  0xac   : > { %1351 = vmatpush3.bf16.msra.mxu0 %v1480_v12  ;;  %1371 = vmatpush3.bf16.msra.mxu1 %v1481_v13 }
  0xad   : > { %1352 = vmatprep.subr.bf16.mxu0 %v1670_v1  ;;  %1372 = vmatprep.subr.bf16.mxu1 %v1670_v1 }
  0xb0   : > { %1353 = vmatpush3.bf16.msra.mxu0 %v1482_v14  ;;  %1373 = vmatpush3.bf16.msra.mxu1 %v1483_v15  ;;  %v1070_v15 = vmul.f32 %v1291_v3, %v622_v6 }
  0xb1   : > { %1354 = vmatprep.subr.bf16.mxu0 %v1670_v1  ;;  %1374 = vmatprep.subr.bf16.mxu1 %v1670_v1 }
  0xb4   : > { %1355 = vmatpush3.bf16.msra.mxu0 %v1484_v16  ;;  %1375 = vmatpush3.bf16.msra.mxu1 %v1485_v17 }
  0xb5   : > { %1380 = vmatprep.subr.bf16.mxu0 %v1670_v1  ;;  %1400 = vmatprep.subr.bf16.mxu1 %v1670_v1 }
  0xb7   : > { %1357 = vmatmul.mubr.bf16.vlgmr.msra.gmra.mrb[0].mxu0 %v1486_v18  ;;  %1377 = vmatmul.mubr.bf16.vlgmr.msra.gmra.mrb[0].mxu1 %v1487_v19 }
  0xb8   : > { %1381 = vmatpush3.bf16.msra.mxu0 %v1488_v20  ;;  %1396 = vmatprep.mubr.msk.bf16.mxu0 %vm1671_vm0, %v1670_v1 }
  0xb9   : > { %1382 = vmatprep.subr.bf16.mxu0 %v1670_v1  ;;  %1408 = vmatprep.mubr.msk.bf16.mxu1 %vm1671_vm0, %v1670_v1 }
  0xba   : > { %1401 = vmatpush3.bf16.msra.mxu1 %v1496_v28 }
  0xbb   : > { %1402 = vmatprep.subr.bf16.mxu1 %v1670_v1 }
  0xbc   : > { %1383 = vmatpush3.bf16.msra.mxu0 %v1489_v21  ;;  %v1293_v21 = vld [vmem:[#allocation2] ss:$0 sm:$0xff] }
  0xbd   : > { %1384 = vmatprep.subr.bf16.mxu0 %v1670_v1 }
  0xbe   : > { %1403 = vmatpush3.bf16.msra.mxu1 %v1497_v29 }
  0xbf   : > { %1404 = vmatprep.subr.bf16.mxu1 %v1670_v1 }
  0xc0   : > { %1385 = vmatpush3.bf16.msra.mxu0 %v1490_v22 }
  0xc1   : > { %1386 = vmatprep.subr.bf16.mxu0 %v1670_v1 }
  0xc2   : > { %1405 = vmatpush3.bf16.msra.mxu1 %v1498_v46 }
  0xc3   : > { %1406 = vmatprep.subr.bf16.mxu1 %v1670_v1 }
  0xc4   : > { %1387 = vmatpush3.bf16.msra.mxu0 %v1491_v23 }
  0xc5   : > { %1388 = vmatprep.subr.bf16.mxu0 %v1670_v1 }
  0xc6   : > { %1407 = vmatpush3.bf16.msra.mxu1 %v1499_v47 }
  0xc8   : > { %1389 = vmatpush3.bf16.msra.mxu0 %v1492_v24 }
  0xc9   : > { %1390 = vmatprep.subr.bf16.mxu0 %v1670_v1 }
  0xcc   : > { %1391 = vmatpush3.bf16.msra.mxu0 %v1493_v25 }
  0xcd   : > { %1392 = vmatprep.subr.bf16.mxu0 %v1670_v1 }
  0xd0   : > { %1393 = vmatpush3.bf16.msra.mxu0 %v1494_v26 }
  0xd1   : > { %1394 = vmatprep.subr.bf16.mxu0 %v1670_v1  ;;  %v621_v1 = vmul.f32 %v1306_v61, %v1302_v60 }
  0xd3   : > { %v1069_v12 = vmul.f32 %v1291_v3, %v621_v1 }
  0xd4   : > { %1395 = vmatpush3.bf16.msra.mxu0 %v1495_v27 }
 0x18a   : > { %v747_v30 = vpop.f32.mrb[0].mxu0  ;;  %v842_v31 = vpop.f32.mrb[0].mxu1 }
 0x18b   : > { %v1358_v33 = vpop.f32.mrb[1].mxu0  ;;  %v843_v34 = vadd.f32 %v842_v31, %v747_v30  ;;  %v1378_v35 = vpop.f32.mrb[1].mxu1 }
 0x18c   : > { %v750_v36 = vpop.f32.mrb[2].mxu0  ;;  %v845_v37 = vpop.f32.mrb[2].mxu1 }
 0x18d   : > { %v1359_v38 = vpop.f32.mrb[3].mxu0  ;;  %v856_v39 = vadd.f32 %v1275_v32, %v843_v34  ;;  %v846_v40 = vadd.f32 %v845_v37, %v750_v36  ;;  %v1379_v41 = vpop.f32.mrb[3].mxu1 }
 0x18f   : > { %v857_v42 = vadd.f32 %v1275_v32, %v846_v40  ;;  %v858_v43 = vmax.f32 %v856_v39, 0.0 }
 0x191   : > { %v859_v44 = vmax.f32 %v857_v42, 0.0 }
 0x193   : > { %v860_v45 = vpack.c.bf16 %v859_v44, %v858_v43 }
 0x195   : > { %1397 = vmatmul.mubr.bf16.vlgmr.msra.gmra.mrb[4].mxu0 %v860_v45 }
 0x268   : > { %v966_v49 = vpop.f32.mrb[4].mxu0 }
 0x269   : > { %v967_v50 = vadd.f32 %v1276_v48, %v966_v49  ;;  %v1398_v51 = vpop.f32.mrb[5].mxu0 }
 0x26a   : > { %v969_v52 = vpop.f32.mrb[6].mxu0 }
 0x26b   : > { %v970_v53 = vadd.f32 %v1276_v48, %v969_v52  ;;  %v1399_v54 = vpop.f32.mrb[7].mxu0  ;;  %v973_v55 = vmax.f32 %v967_v50, 0.0 }
 0x26d   : > { %v974_v56 = vmax.f32 %v970_v53, 0.0 }
 0x26f   : > { %v975_v57 = vpack.c.bf16 %v974_v56, %v973_v55 }
 0x271   : > { %1409 = vmatmul.mubr.msk.bf16.vlgmr.msra.gmra.mrb[4].mxu1 %vm1015_vm1, %v975_v57 }
 0x344   : > { %v1053_v2 = vpop.f32.mrb[4].mxu1 }
 0x345   : > { %v1054_v4 = vadd.f32 %v1285_v0, %v1053_v2  ;;  %v1410_v5 = vpop.f32.mrb[5].mxu1 }
 0x346   : > { %v1056_v8 = vpop.f32.mrb[6].mxu1 }
 0x347   : > { %v1060_v9 = vmax.f32 %v1054_v4, 0.0  ;;  %v1057_v10 = vadd.f32 %v1285_v0, %v1056_v8  ;;  %v1411_v11 = vpop.f32.mrb[7].mxu1 }
 0x349   : > { %v1078_v13 = vmul.f32 %v1292_v7, %v1060_v9  ;;  %v1061_v14 = vmax.f32 %v1057_v10, 0.0 }
 0x34b   : > { %v1079_v16 = vmul.f32 %v1292_v7, %v1061_v14  ;;  %v1080_v17 = vadd.f32 %v1078_v13, %v1069_v12 }
 0x34d   : > { %v1083_v18 = vsel %vm1082_vm2, %v1080_v17, 0.0  ;;  %v1081_v19 = vadd.f32 %v1079_v16, %v1070_v15 }
 0x34e   : > { %1084 = vadd.xlane.f32.xlu0 %v1083_v18 }
 0x34f   : > { %v1086_v20 = vsel %vm1082_vm2, %v1081_v19, 0.0 }
 0x352   : > { %1087 = vadd.xlane.f32.xlu0 %v1086_v20 }
 0x3db   : > { %v1085_v22 = vpop.xlane.xlu0 %1084 }
 0x3dc   : > { %v1096_v23 = vadd.f32 %v1293_v21, %v1085_v22 }
 0x3de   : > { %1099 = vst.msk [vmem:[%s610_s21] sm:$0xff] %vm1098_vm3, %v1096_v23 }
 0x3df   : > { %v1088_v24 = vpop.xlane.xlu0 %1087 }
 0x3e0   : > { %v1097_v25 = vadd.f32 %v1293_v21, %v1088_v24 }
 0x3e2   : > { %1100 = vst.msk [vmem:[%s610_s21 + $0x8] sm:$0xff] %vm1098_vm3, %v1097_v25 }
 0x3e3 PF: > { %s2194_s18 = sld [smem:[#allocation14_spill]]  ;;  %s2195_s8 = sld [smem:[#allocation13_spill]] }
 0x3e4   : > { %s2196_s17 = sld [smem:[#allocation15_spill]]  ;;  %s2197_s15 = smov %s1654_s16 }
 0x3e9   : > { %p32_p3 = scmp.ge.s32.totalorder %s2194_s18, 4   ;;  %s2198_s16 = smov %s2195_s8 }
 0x3eb   :  { %34 = sbr.rel (!%p32_p3) target bundleno = 15 (0xf), region = 153 }
 0x3f2   :  { %1123 = vsyncpa [#allocation4], 1 }
 0x3f3   :  { %1125 = vsyncpa [#allocation4 + $0x1], 1 }
 0x3f4   :  { %1126 = vsyncpa [#allocation6], 1 }
 0x3f5   :  { %1128 = vsyncpa [#allocation6 + $0x1], 1 }
 0x3f6   :  { %1129 = vsyncpa [#allocation9], 1 }
 0x3f7   :  { %1131 = vsyncpa [#allocation9 + $0x1], 1 }

</bundles_post_ra>
